<compile_context>
chip_gen: v6e
topology: v6e:2x2x1
jax: 0.10.0
libtpu: 0.0.40
codegen_flags: <defaults>
</compile_context>

<pallas_src>
import functools

import jax
import jax.numpy as jnp
from jax import lax
from jax.experimental import pallas as pl
from jax.experimental.pallas import tpu as pltpu


# ----------------------------------------------------------------------------
# Tile-size selection for the flattened spatial dim (lane axis).
# ----------------------------------------------------------------------------
def _choose_tl(L, C, max_bytes):
    """Largest multiple of 128 that divides L and keeps a (C, TL) f32 tile
    under max_bytes.  Falls back to the full extent when L % 128 != 0
    (full-dim blocks are always legal)."""
    if L % 128 != 0:
        return L
    cap = max(128, (max_bytes // (4 * max(C, 1))) // 128 * 128)
    tl = min(L, cap)
    while L % tl != 0:
        tl -= 128
    return max(tl, 128)


# ----------------------------------------------------------------------------
# Pass 1: per-channel batch statistics (tiled accumulation) + fused
# gamma/beta linear, folded into per-(n, c) scale / shift.
# ----------------------------------------------------------------------------
def _stats_affine_kernel(x_ref, style_ref, w_ref, b_ref,
                         scale_ref, shift_ref,
                         acc_sum, acc_sq, *, count, eps, C):
    n_i = pl.program_id(0)
    l_i = pl.program_id(1)

    @pl.when((n_i == 0) & (l_i == 0))
    def _init():
        acc_sum[...] = jnp.zeros_like(acc_sum)
        acc_sq[...] = jnp.zeros_like(acc_sq)

    xv = x_ref[...].astype(jnp.float32)                 # (1, C, TL)
    acc_sum[...] += jnp.sum(xv, axis=2)                 # (1, C)
    acc_sq[...] += jnp.sum(xv * xv, axis=2)             # (1, C)

    @pl.when((n_i == pl.num_programs(0) - 1) & (l_i == pl.num_programs(1) - 1))
    def _finalize():
        inv = jnp.float32(1.0 / count)
        mean = acc_sum[...] * inv                       # (1, C)
        var = acc_sq[...] * inv - mean * mean           # biased variance
        rstd = lax.rsqrt(var + jnp.float32(eps))        # (1, C)
        # Fused gamma/beta linear: one MXU matmul against concatenated weights.
        gb = jnp.dot(style_ref[...].astype(jnp.float32),
                     w_ref[...].astype(jnp.float32),
                     preferred_element_type=jnp.float32) + b_ref[...]  # (N, 2C)
        gamma = gb[:, :C]                               # (N, C)
        beta = gb[:, C:]                                # (N, C)
        scale = rstd * (1.0 + gamma)                    # (N, C)
        shift = beta - mean * scale                     # (N, C)
        scale_ref[...] = scale
        shift_ref[...] = shift


# ----------------------------------------------------------------------------
# Pass 2: out[n, c, l] = x[n, c, l] * scale[n, c] + shift[n, c]
# ----------------------------------------------------------------------------
def _modulate_kernel(x_ref, scale_ref, shift_ref, o_ref):
    xv = x_ref[...].astype(jnp.float32)                 # (1, C, TL)
    out = xv * scale_ref[...] + shift_ref[...]          # (1, C, 1) lane-broadcast
    o_ref[...] = out.astype(o_ref.dtype)


# ----------------------------------------------------------------------------
# AdaIN forward (NCHW x, (N, hidden) style) -> NCHW out.
# ----------------------------------------------------------------------------
def adain_forward(x_nchw, style_feat, params, eps=1e-5):
    N, C, H, W = x_nchw.shape
    L = H * W
    hidden = params["w_gamma"].shape[0]

    x3 = x_nchw.reshape(N, C, L)
    style = style_feat.reshape(N, hidden)

    # Concatenate gamma/beta weights along Cout -> single matmul inside kernel.
    w_cat = jnp.concatenate([params["w_gamma"], params["w_beta"]], axis=1)  # (hidden, 2C)
    b_cat = jnp.concatenate([params["b_gamma"], params["b_beta"]], axis=0)  # (2C,)
    b_cat = b_cat.reshape(1, 2 * C)

    # Stats pass: only the input is double-buffered -> allow bigger tiles.
    TL_s = _choose_tl(L, C, max_bytes=4 << 20)
    # Modulate pass: input + output are each double-buffered -> ~4 tiles live.
    TL_m = _choose_tl(L, C, max_bytes=2 << 20)

    stats_kernel = functools.partial(
        _stats_affine_kernel, count=N * L, eps=eps, C=C)

    scale, shift = pl.pallas_call(
        stats_kernel,
        out_shape=(jax.ShapeDtypeStruct((N, C), jnp.float32),
                   jax.ShapeDtypeStruct((N, C), jnp.float32)),
        grid=(N, L // TL_s),
        in_specs=[
            pl.BlockSpec((1, C, TL_s), lambda n, l: (n, 0, l)),
            pl.BlockSpec((N, hidden), lambda n, l: (0, 0)),
            pl.BlockSpec((hidden, 2 * C), lambda n, l: (0, 0)),
            pl.BlockSpec((1, 2 * C), lambda n, l: (0, 0)),
        ],
        out_specs=(pl.BlockSpec((N, C), lambda n, l: (0, 0)),
                   pl.BlockSpec((N, C), lambda n, l: (0, 0))),
        scratch_shapes=[pltpu.VMEM((1, C), jnp.float32),
                        pltpu.VMEM((1, C), jnp.float32)],
        compiler_params=pltpu.CompilerParams(
            dimension_semantics=("arbitrary", "arbitrary")),
    )(x3, style, w_cat, b_cat)

    # Tiny metadata reshape so the modulate kernel broadcasts along lanes only
    # (C lands on sublanes straight from the DMA; no in-kernel relayout).
    scale3 = scale.reshape(N, C, 1)
    shift3 = shift.reshape(N, C, 1)

    out3 = pl.pallas_call(
        _modulate_kernel,
        out_shape=jax.ShapeDtypeStruct((N, C, L), x_nchw.dtype),
        grid=(N, L // TL_m),
        in_specs=[
            pl.BlockSpec((1, C, TL_m), lambda n, l: (n, 0, l)),
            pl.BlockSpec((1, C, 1), lambda n, l: (n, 0, 0)),
            pl.BlockSpec((1, C, 1), lambda n, l: (n, 0, 0)),
        ],
        out_specs=pl.BlockSpec((1, C, TL_m), lambda n, l: (n, 0, l)),
        compiler_params=pltpu.CompilerParams(
            dimension_semantics=("parallel", "parallel")),
    )(x3, scale3, shift3)

    return out3.reshape(N, C, H, W)


# ----------------------------------------------------------------------------
# Pure-JAX reference for validation.
# ----------------------------------------------------------------------------
def adain_reference(x, style, params, eps=1e-5):
    N, C = x.shape[:2]
    mean = jnp.mean(x, axis=(0, 2, 3), keepdims=True)
    var = jnp.mean(jnp.square(x - mean), axis=(0, 2, 3), keepdims=True)
    normalized = (x - mean) / jnp.sqrt(var + eps)
    gamma = style @ params["w_gamma"] + params["b_gamma"]   # (N, C)
    beta = style @ params["w_beta"] + params["b_beta"]      # (N, C)
    gamma = gamma.reshape(N, C, 1, 1)
    beta = beta.reshape(N, C, 1, 1)
    return normalized * (1.0 + gamma) + beta


# ----------------------------------------------------------------------------
# Deterministic parameter init (nn.Linear default init; weights stored
# pre-transposed as (hidden_nc, norm_nc)).
# ----------------------------------------------------------------------------
def init_params(key, hidden_nc, norm_nc):
    k = jax.random.split(key, 4)
    bound = 1.0 / jnp.sqrt(hidden_nc)

    def lin(kw, kb):
        w = jax.random.uniform(kw, (hidden_nc, norm_nc), jnp.float32, -bound, bound)
        b = jax.random.uniform(kb, (norm_nc,), jnp.float32, -bound, bound)
        return w, b

    w_g, b_g = lin(k[0], k[1])
    w_b, b_b = lin(k[2], k[3])
    return {"w_gamma": w_g, "b_gamma": b_g, "w_beta": w_b, "b_beta": b_b}


if __name__ == "__main__":
    key = jax.random.PRNGKey(0)
    k_x, k_s, k_p = jax.random.split(key, 3)

    batch, norm_nc, hidden_nc = 2, 4, 32
    H = W = 16

    x = jax.random.normal(k_x, (batch, norm_nc, H, W), jnp.float32)       # NCHW
    style_feat = jax.random.normal(k_s, (batch, hidden_nc), jnp.float32)  # (N, hidden)
    params = init_params(k_p, hidden_nc, norm_nc)

    # TODO(synk): BatchNorm running_mean/var buffer updates (training-side state)
    # are not modeled; they do not affect the forward output.
    out = jax.block_until_ready(adain_forward(x, style_feat, params))
    ref = jax.block_until_ready(adain_reference(x, style_feat, params))

    assert out.shape == (batch, norm_nc, H, W)
    assert jnp.max(jnp.abs(out - ref)) < 1e-4, "Pallas AdaIN mismatch vs reference"

    print("KERNEL_OK")
</pallas_src>

<mosaic_0001>
module attributes {stable_mosaic.version = 11 : i64} {
  func.func @_stats_affine_kernel(%arg0: i32, %arg1: i32, %arg2: memref<1x4x256xf32, #tpu.memory_space<vmem>>, %arg3: memref<2x32xf32, #tpu.memory_space<vmem>>, %arg4: memref<32x8xf32, #tpu.memory_space<vmem>>, %arg5: memref<1x8xf32, #tpu.memory_space<vmem>>, %arg6: memref<2x4xf32, #tpu.memory_space<vmem>>, %arg7: memref<2x4xf32, #tpu.memory_space<vmem>>, %arg8: memref<1x4xf32, #tpu.memory_space<vmem>>, %arg9: memref<1x4xf32, #tpu.memory_space<vmem>>) attributes {dimension_semantics = [#tpu.dimension_semantics<arbitrary>, #tpu.dimension_semantics<arbitrary>], iteration_bounds = array<i64: 2, 1>, scalar_prefetch = 0 : i64, scratch_operands = 2 : i64, tpu.core_type = #tpu.core_type<tc>, window_params = [{transform_indices = @transform_0, window_bounds = array<i64: 1, 4, 256>}, {pipeline_mode = #tpu.pipeline_mode<synchronous>, transform_indices = @transform_1, window_bounds = array<i64: 2, 32>}, {pipeline_mode = #tpu.pipeline_mode<synchronous>, transform_indices = @transform_2, window_bounds = array<i64: 32, 8>}, {pipeline_mode = #tpu.pipeline_mode<synchronous>, transform_indices = @transform_3, window_bounds = array<i64: 1, 8>}, {pipeline_mode = #tpu.pipeline_mode<synchronous>, transform_indices = @transform_4, window_bounds = array<i64: 2, 4>}, {pipeline_mode = #tpu.pipeline_mode<synchronous>, transform_indices = @transform_5, window_bounds = array<i64: 2, 4>}]} {
    %c0_i32 = arith.constant 0 : i32
    %0 = arith.cmpi eq, %arg0, %c0_i32 : i32
    %c0_i32_0 = arith.constant 0 : i32
    %1 = arith.cmpi eq, %arg1, %c0_i32_0 : i32
    %2 = arith.andi %0, %1 : i1
    %3 = arith.extui %2 : i1 to i32
    %c0_i32_1 = arith.constant 0 : i32
    %4 = arith.cmpi ne, %3, %c0_i32_1 : i32
    scf.if %4 {
      %cst_15 = arith.constant 0.000000e+00 : f32
      %20 = vector.broadcast %cst_15 : f32 to vector<1x4xf32>
      %c0_16 = arith.constant 0 : index
      %c0_17 = arith.constant 0 : index
      %21 = vector.load %arg8[%c0_16, %c0_17] : memref<1x4xf32, #tpu.memory_space<vmem>>, vector<1x4xf32>
      tpu.vector_store %arg8[%c0_16, %c0_17], %20 {strides = array<i32>} : memref<1x4xf32, #tpu.memory_space<vmem>>, vector<1x4xf32>,
      %cst_18 = arith.constant 0.000000e+00 : f32
      %22 = vector.broadcast %cst_18 : f32 to vector<1x4xf32>
      %c0_19 = arith.constant 0 : index
      %c0_20 = arith.constant 0 : index
      %23 = vector.load %arg9[%c0_19, %c0_20] : memref<1x4xf32, #tpu.memory_space<vmem>>, vector<1x4xf32>
      tpu.vector_store %arg9[%c0_19, %c0_20], %22 {strides = array<i32>} : memref<1x4xf32, #tpu.memory_space<vmem>>, vector<1x4xf32>,
    } else {
    }
    %c0 = arith.constant 0 : index
    %c0_2 = arith.constant 0 : index
    %c0_3 = arith.constant 0 : index
    %5 = vector.load %arg2[%c0, %c0_2, %c0_3] : memref<1x4x256xf32, #tpu.memory_space<vmem>>, vector<1x4x256xf32>
    %c0_4 = arith.constant 0 : index
    %c0_5 = arith.constant 0 : index
    %6 = vector.load %arg8[%c0_4, %c0_5] : memref<1x4xf32, #tpu.memory_space<vmem>>, vector<1x4xf32>
    %cst = arith.constant dense<0.000000e+00> : vector<1x4xf32>
    %7 = vector.multi_reduction <add>, %5, %cst [2] : vector<1x4x256xf32> to vector<1x4xf32>
    %8 = arith.addf %6, %7 : vector<1x4xf32>
    %c0_6 = arith.constant 0 : index
    %c0_7 = arith.constant 0 : index
    %9 = vector.load %arg8[%c0_6, %c0_7] : memref<1x4xf32, #tpu.memory_space<vmem>>, vector<1x4xf32>
    tpu.vector_store %arg8[%c0_6, %c0_7], %8 {strides = array<i32>} : memref<1x4xf32, #tpu.memory_space<vmem>>, vector<1x4xf32>,
    %c0_8 = arith.constant 0 : index
    %c0_9 = arith.constant 0 : index
    %10 = vector.load %arg9[%c0_8, %c0_9] : memref<1x4xf32, #tpu.memory_space<vmem>>, vector<1x4xf32>
    %11 = arith.mulf %5, %5 : vector<1x4x256xf32>
    %cst_10 = arith.constant dense<0.000000e+00> : vector<1x4xf32>
    %12 = vector.multi_reduction <add>, %11, %cst_10 [2] : vector<1x4x256xf32> to vector<1x4xf32>
    %13 = arith.addf %10, %12 : vector<1x4xf32>
    %c0_11 = arith.constant 0 : index
    %c0_12 = arith.constant 0 : index
    %14 = vector.load %arg9[%c0_11, %c0_12] : memref<1x4xf32, #tpu.memory_space<vmem>>, vector<1x4xf32>
    tpu.vector_store %arg9[%c0_11, %c0_12], %13 {strides = array<i32>} : memref<1x4xf32, #tpu.memory_space<vmem>>, vector<1x4xf32>,
    %c1_i32 = arith.constant 1 : i32
    %15 = arith.cmpi eq, %arg0, %c1_i32 : i32
    %c0_i32_13 = arith.constant 0 : i32
    %16 = arith.cmpi eq, %arg1, %c0_i32_13 : i32
    %17 = arith.andi %15, %16 : i1
    %18 = arith.extui %17 : i1 to i32
    %c0_i32_14 = arith.constant 0 : i32
    %19 = arith.cmpi ne, %18, %c0_i32_14 : i32
    scf.if %19 {
      %c0_15 = arith.constant 0 : index
      %c0_16 = arith.constant 0 : index
      %20 = vector.load %arg8[%c0_15, %c0_16] : memref<1x4xf32, #tpu.memory_space<vmem>>, vector<1x4xf32>
      %cst_17 = arith.constant 0.001953125 : f32
      %21 = vector.broadcast %cst_17 : f32 to vector<1x4xf32>
      %22 = arith.mulf %20, %21 : vector<1x4xf32>
      %c0_18 = arith.constant 0 : index
      %c0_19 = arith.constant 0 : index
      %23 = vector.load %arg9[%c0_18, %c0_19] : memref<1x4xf32, #tpu.memory_space<vmem>>, vector<1x4xf32>
      %cst_20 = arith.constant 0.001953125 : f32
      %24 = vector.broadcast %cst_20 : f32 to vector<1x4xf32>
      %25 = arith.mulf %23, %24 : vector<1x4xf32>
      %26 = arith.mulf %22, %22 : vector<1x4xf32>
      %27 = arith.subf %25, %26 : vector<1x4xf32>
      %cst_21 = arith.constant 9.99999974E-6 : f32
      %28 = vector.broadcast %cst_21 : f32 to vector<1x4xf32>
      %29 = arith.addf %27, %28 : vector<1x4xf32>
      %30 = math.rsqrt %29 : vector<1x4xf32>
      %c0_22 = arith.constant 0 : index
      %c0_23 = arith.constant 0 : index
      %31 = vector.load %arg3[%c0_22, %c0_23] : memref<2x32xf32, #tpu.memory_space<vmem>>, vector<2x32xf32>
      %c0_24 = arith.constant 0 : index
      %c0_25 = arith.constant 0 : index
      %32 = vector.load %arg4[%c0_24, %c0_25] : memref<32x8xf32, #tpu.memory_space<vmem>>, vector<32x8xf32>
      %cst_26 = arith.constant dense<0.000000e+00> : vector<2x8xf32>
      %33 = tpu.matmul %31, %32, %cst_26 {dimension_numbers = #tpu.dot_dimension_numbers<[1], [0], [0], [1], [0, 0, 1, 1], [], []>} : vector<2x32xf32>, vector<32x8xf32>, vector<2x8xf32> -> vector<2x8xf32>
      %c0_27 = arith.constant 0 : index
      %c0_28 = arith.constant 0 : index
      %34 = vector.load %arg5[%c0_27, %c0_28] : memref<1x8xf32, #tpu.memory_space<vmem>>, vector<1x8xf32>
      %35 = vector.broadcast %34 : vector<1x8xf32> to vector<2x8xf32>
      %36 = arith.addf %33, %35 : vector<2x8xf32>
      %37 = vector.extract_strided_slice %36 {offsets = [0, 0], sizes = [2, 4], strides = [1, 1]} : vector<2x8xf32> to vector<2x4xf32>
      %38 = vector.extract_strided_slice %36 {offsets = [0, 4], sizes = [2, 4], strides = [1, 1]} : vector<2x8xf32> to vector<2x4xf32>
      %cst_29 = arith.constant 1.000000e+00 : f32
      %39 = vector.broadcast %cst_29 : f32 to vector<2x4xf32>
      %40 = arith.addf %39, %37 : vector<2x4xf32>
      %41 = vector.broadcast %30 : vector<1x4xf32> to vector<2x4xf32>
      %42 = arith.mulf %41, %40 : vector<2x4xf32>
      %43 = vector.broadcast %22 : vector<1x4xf32> to vector<2x4xf32>
      %44 = arith.mulf %43, %42 : vector<2x4xf32>
      %45 = arith.subf %38, %44 : vector<2x4xf32>
      %c0_30 = arith.constant 0 : index
      %c0_31 = arith.constant 0 : index
      %46 = vector.load %arg6[%c0_30, %c0_31] : memref<2x4xf32, #tpu.memory_space<vmem>>, vector<2x4xf32>
      tpu.vector_store %arg6[%c0_30, %c0_31], %42 {strides = array<i32>} : memref<2x4xf32, #tpu.memory_space<vmem>>, vector<2x4xf32>,
      %c0_32 = arith.constant 0 : index
      %c0_33 = arith.constant 0 : index
      %47 = vector.load %arg7[%c0_32, %c0_33] : memref<2x4xf32, #tpu.memory_space<vmem>>, vector<2x4xf32>
      tpu.vector_store %arg7[%c0_32, %c0_33], %45 {strides = array<i32>} : memref<2x4xf32, #tpu.memory_space<vmem>>, vector<2x4xf32>,
    } else {
    }
    return
  }
  func.func @transform_0(%arg0: i32, %arg1: i32) -> (i32, i32, i32) {
    %c0_i32 = arith.constant 0 : i32
    %c0_i32_0 = arith.constant 0 : i32
    return %arg0, %c0_i32, %arg1 : i32, i32, i32
  }
  func.func @transform_1(%arg0: i32, %arg1: i32) -> (i32, i32) {
    %c0_i32 = arith.constant 0 : i32
    %c0_i32_0 = arith.constant 0 : i32
    %c0_i32_1 = arith.constant 0 : i32
    return %c0_i32, %c0_i32_0 : i32, i32
  }
  func.func @transform_2(%arg0: i32, %arg1: i32) -> (i32, i32) {
    %c0_i32 = arith.constant 0 : i32
    %c0_i32_0 = arith.constant 0 : i32
    %c0_i32_1 = arith.constant 0 : i32
    return %c0_i32, %c0_i32_0 : i32, i32
  }
  func.func @transform_3(%arg0: i32, %arg1: i32) -> (i32, i32) {
    %c0_i32 = arith.constant 0 : i32
    %c0_i32_0 = arith.constant 0 : i32
    %c0_i32_1 = arith.constant 0 : i32
    return %c0_i32, %c0_i32_0 : i32, i32
  }
  func.func @transform_4(%arg0: i32, %arg1: i32) -> (i32, i32) {
    %c0_i32 = arith.constant 0 : i32
    %c0_i32_0 = arith.constant 0 : i32
    %c0_i32_1 = arith.constant 0 : i32
    return %c0_i32, %c0_i32_0 : i32, i32
  }
  func.func @transform_5(%arg0: i32, %arg1: i32) -> (i32, i32) {
    %c0_i32 = arith.constant 0 : i32
    %c0_i32_0 = arith.constant 0 : i32
    %c0_i32_1 = arith.constant 0 : i32
    return %c0_i32, %c0_i32_0 : i32, i32
  }
}

</mosaic_0001>

<bundles_post_ra>
// kernel: tpu_custom_call.1
= control target key start
LH: loop header
LB: loop body
LE: loop exit
PB: predicated region body
PF: predicated region fallthrough
CT: control target
= control target key end

     0   :  { %11 = vsyncpa [#allocation5], 0  ;;  %s905_s0 = inlined_call_operand.vmem [shape: f32[2,4,256], index: 0, kind: input, shape index: {}]   ;;  %s906_s1 = inlined_call_operand.vmem [shape: f32[2,32], index: 1, kind: input, shape index: {}]   ;;  %s907_s2 = inlined_call_operand.vmem [shape: f32[32,8], index: 2, kind: input, shape index: {}]   ;;  %s908_s3 = inlined_call_operand.vmem [shape: f32[1,8], index: 3, kind: input, shape index: {}]   ;;  %s909_s4 = inlined_call_operand.hbm [shape: f32[2,4], index: 4, kind: output, shape index: {0}]   ;;  %s910_s5 = inlined_call_operand.hbm [shape: f32[2,4], index: 5, kind: output, shape index: {1}]  }
   0x1   :  { %12 = vsyncpa [#allocation7], 0  ;;  %s814_s18 = smov 0   ;;  %s816_s19 = smov 0  }
   0x2   :  { %s818_s20 = smov 0  }
   0x3 LB: > { %s610_s21 = sadd.s32 4294967295, %s773_s20   ;;  %s30_s22 = sadd.s32 1, %s769_s19  ;;  %s773_s20 = sphi %s818_s20, %s18_s20   ;;  %s769_s19 = sphi %s816_s19, %s913_s19   ;;  %s765_s18 = sphi %s814_s18, %s912_s18  }
   0x4   : > { %p32_p0 = scmp.ge.s32.totalorder %s30_s22, 2  ;;  %p613_p1 = scmp.ge.s32.totalorder %s773_s20, 1 }
   0x5   : > { %p201_p2 = scmp.lt.s32.totalorder %s773_s20, 3 }
   0x6   : > { %s915_s22 = smov (%p32_p0, %s30_s22), 0 }
   0x7   : > { %p202_p3 = pnand %p613_p1, %p201_p2 }
   0x8   : > { %p229_p4 = scmp.lt.s32.totalorder (!%p202_p3), %s765_s18, 1  ;;  %p238_p5 = scmp.eq.s32.totalorder (!%p202_p3), %s765_s18, 0 }
   0x9   : > { %205 = sbr.rel (%p202_p3) target bundleno = 606 (0x25e), region = 36 }
   0xe   : > { %s230_s23 = scalar_select %p229_p4, %s765_s18, 1  ;;  %vm244_vm0 = vcmask (%p238_p5), 24576   ;;  %v775_v0 = vmov (%p238_p5), 0.0  }
   0xf   : > { %243 = sbr.rel (!%p238_p5) target bundleno = 20 (0x14), region = 40  ;;  %245 = vst.msk [vmem:[#allocation2] sm:$0x1] (%p238_p5), %vm244_vm0, %v775_v0  ;;  %246 = vst.msk [vmem:[#allocation3] sm:$0x1] (%p238_p5), %vm244_vm0, %v775_v0 }
  0x10   : > { %s626_s24 = sshll.u32 %s230_s23, 3 }
  0x11   : > { %s236_s27 = scalar_lea.vmem %s905_s0, %s626_s24 }
  0x14 PF: > { %v247_v1 = vld [vmem:[%s236_s27] sm:$0xff]  ;;  %vm252_vm1 = vcmask 1043456   ;;  %v776_v11 = vmov 0   ;;  %v259_v12 = vlaneseq  ;;  %v777_v16 = vmov 1966171168   ;;  %p401_p6 = scmp.eq.s32.totalorder %s765_s18, 1 }
  0x15   : > { %v250_v2 = vcombine.high %v247_v1, %v247_v1  ;;  %v253_v3 = vsel %vm252_vm1, %v247_v1, 0.0  ;;  %v327_v4 = vmul.f32 %v247_v1, %v247_v1  ;;  %690 = vset.pattern.permute.xlu1 %v776_v11  ;;  %691 = vset.pattern.permute.xlu0 %v776_v11  ;;  %v278_v17 = vunpack.c.l.s4 %v777_v16  ;;  %v418_v58 = vld [vmem:[%s907_s2 + $0x18] sm:$0xff] (%p401_p6)  ;;  %v417_v60 = vld [vmem:[%s907_s2 + $0x10] sm:$0xff] (%p401_p6)  ;;  %v416_v61 = vld [vmem:[%s907_s2 + $0x8] sm:$0xff] (%p401_p6)  ;;  %s780_s15 = smov (%p401_p6), 4   ;;  %s781_s16 = smov (%p401_p6), 124  }
  0x16   : > { %v260_v13 = vshrl.u32 %v259_v12, 7  ;;  %v303_v14 = vand.u32 127, %v259_v12  ;;  %v248_v49 = vld [vmem:[#allocation2] sm:$0x1]  ;;  %vm324_vm2 = vcmask 24576   ;;  %v778_v59 = vmov (%p401_p6), 0.0  }
  0x17   : > { %v254_v5 = vsel %vm252_vm1, %v250_v2, 0.0  ;;  %v329_v6 = vcombine.high %v327_v4, %v327_v4  ;;  %v331_v7 = vsel %vm252_vm1, %v327_v4, 0.0  ;;  %v279_v22 = vunpack.c.0.s8 %v278_v17  ;;  %v326_v55 = vld [vmem:[#allocation3] sm:$0x1]  ;;  %634 = vmatprep.subr.mxu0 (%p401_p6), %v778_v59 }
  0x18   : > { %v255_v8 = vadd.f32 %v254_v5, %v253_v3  ;;  %v306_v15 = vsub.s32 %v303_v14, %v260_v13  ;;  %v841_v18 = vsub.s32 0, %v260_v13  ;;  %v265_v19 = vsub.s32 1, %v260_v13  ;;  %635 = vmatpush3.msra.mxu0 (%p401_p6), %v418_v58  ;;  %v415_v62 = vld [vmem:[%s907_s2] sm:$0xff] (%p401_p6) }
  0x19   : > { %v332_v9 = vsel %vm252_vm1, %v329_v6, 0.0  ;;  %v269_v20 = vsub.s32 2, %v260_v13  ;;  %v273_v21 = vsub.s32 3, %v260_v13  ;;  %v282_v28 = vsub.s32 %v279_v22, %v260_v13  ;;  %636 = vmatprep.subr.mxu0 (%p401_p6), %v778_v59  ;;  %v414_v63 = vld [vmem:[%s906_s1] sm:$0x3] (%p401_p6) }
  0x1a   : > { %256 = vadd.xlane.f32.xlu0 %v255_v8  ;;  %v333_v10 = vadd.f32 %v332_v9, %v331_v7  ;;  %vm779_vm3 = vmmov (%p401_p6), 0   ;;  %637 = vmatpush3.msra.mxu0 (%p401_p6), %v417_v60  ;;  %vm426_vm4 = vcmask (%p401_p6), 261120   ;;  %v618_v8 = vld [vmem:[%s908_s3] ss:$0 sm:$0xff] (%p401_p6)  ;;  %vm520_vm5 = vcmask (%p401_p6), 25600  }
  0x1b   : > { %642 = vmatprep.mubr.msk.f32.mxu0 (%p401_p6), %vm779_vm3, %v778_v59  ;;  %638 = vmatprep.subr.mxu0 (%p401_p6), %v778_v59 }
  0x1c   : > { %639 = vmatpush3.msra.mxu0 (%p401_p6), %v416_v61 }
  0x1d   : > { %640 = vmatprep.subr.mxu0 (%p401_p6), %v778_v59 }
  0x1e   : > { %334 = vadd.xlane.f32.xlu0 %v333_v10  ;;  %641 = vmatpush3.msra.mxu0 (%p401_p6), %v415_v62 }
  0x1f   : > { %643 = vmatmul.mubr.msk.f32.vlgmr.msra.gmra.mxu0 (%p401_p6), %vm426_vm4, %v414_v63 }
  0xa3   : > { %v257_v23 = vpop.xlane.xlu0 %256 }
  0xa4   : > { %v262_v24 = vrot.slane %v257_v23, %v841_v18  ;;  %v266_v25 = vrot.slane %v257_v23, %v265_v19  ;;  %v270_v26 = vrot.slane %v257_v23, %v269_v20  ;;  %v274_v27 = vrot.slane %v257_v23, %v273_v21 }
  0xa6   : > { %v275_v29 = vcombine.low %v262_v24, %v266_v25  ;;  %v276_v30 = vcombine.low %v270_v26, %v274_v27 }
  0xa7   : > { %v335_v31 = vpop.xlane.xlu0 %334 }
  0xa8   : > { %v340_v32 = vrot.slane %v335_v31, %v841_v18  ;;  %v344_v33 = vrot.slane %v335_v31, %v265_v19  ;;  %v348_v34 = vrot.slane %v335_v31, %v269_v20  ;;  %v352_v35 = vrot.slane %v335_v31, %v273_v21 }
  0xa9   : > { %v283_v36 = vrot.slane %v275_v29, %v282_v28  ;;  %v290_v37 = vrot.slane %v276_v30, %v282_v28 }
  0xaa   : > { %v353_v38 = vcombine.low %v340_v32, %v344_v33  ;;  %v354_v39 = vcombine.low %v348_v34, %v352_v35 }
  0xab   : > { %v291_v40 = vcombine.low %v283_v36, %v290_v37 }
  0xac   : > { %v361_v41 = vrot.slane %v353_v38, %v282_v28  ;;  %v368_v42 = vrot.slane %v354_v39, %v282_v28 }
  0xad   : > { %v298_v43 = vrot.slane %v291_v40, %v282_v28 }
  0xae   : > { %v369_v44 = vcombine.low %v361_v41, %v368_v42 }
  0xaf   : > { %300 = vperm.xlu1 %690, %v298_v43  }
  0xb0   : > { %v376_v45 = vrot.slane %v369_v44, %v282_v28 }
  0xb3   : > { %378 = vperm.xlu1 %690, %v376_v45  }
  0xdf   : > { %v496_v9 = vpop.f32.mrf.mxu0 (%p401_p6) }
  0xe0   : > { %v497_v10 = vadd.f32 (%p401_p6), %v618_v8, %v496_v9 }
  0xe1   : > { %v644_v12 = vpop.f32.mrf.mxu0 (%p401_p6) }
  0xe2   : > { %v500_v13 = vadd.f32 (%p401_p6), 1.0, %v497_v10 }
 0x12a   : > { %v301_v46 = vpop.permute.xlu1 %300 }
 0x12b   : > { %v307_v47 = vrot.slane %v301_v46, %v306_v15 }
 0x12d   : > { %v314_v48 = vrot.slane %v307_v47, %v282_v28 }
 0x12e   : > { %v379_v50 = vpop.permute.xlu1 %378 }
 0x12f   : > { %v321_v51 = vrot.slane %v314_v48, %v282_v28  ;;  %v383_v52 = vrot.slane %v379_v50, %v306_v15 }
 0x131   : > { %v323_v53 = vadd.f32 %v321_v51, %v248_v49  ;;  %v390_v54 = vrot.slane %v383_v52, %v282_v28 }
 0x133   : > { %325 = vst.msk [vmem:[#allocation2] sm:$0x1] %vm324_vm2, %v323_v53  ;;  %v397_v56 = vrot.slane %v390_v54, %v282_v28  ;;  %405 = sbr.rel (!%p401_p6) target bundleno = 578 (0x242), region = 44 }
 0x135   : > { %v399_v57 = vadd.f32 %v397_v56, %v326_v55 }
 0x137   : > { %400 = vst.msk [vmem:[#allocation3] sm:$0x1] %vm324_vm2, %v399_v57 }
 0x13a   : > { %v406_v0 = vld [vmem:[#allocation2] sm:$0x1] }
 0x13b   : > { %v407_v1 = vmul.f32 0.001953125, %v406_v0 }
 0x13d   : > { %v410_v4 = vmul.f32 %v407_v1, %v407_v1  ;;  %v512_v14 = vrot.slane %v407_v1, %v841_v18 }
 0x13e   : > { %v408_v2 = vld [vmem:[#allocation3] sm:$0x1] }
 0x13f   : > { %v409_v3 = vmul.f32 0.001953125, %v408_v2 }
 0x141   : > { %v411_v5 = vsub.f32 %v409_v3, %v410_v4 }
 0x143   : > { %v412_v6 = vadd.f32 1e-05, %v411_v5 }
 0x145   : > { %693 = vrsqrt.f32 %v412_v6 }
 0x152   : > { %v694_v7 = vpop.eup %693 }
 0x153   : > { %v505_v11 = vrot.slane %v694_v7, %v841_v18 }
 0x155   : > { %v507_v15 = vmul.f32 %v505_v11, %v500_v13 }
 0x157   : > { %v514_v16 = vmul.f32 %v512_v14, %v507_v15  ;;  %521 = vst.msk [vmem:[#allocation4] sm:$0x3] %vm520_vm5, %v507_v15 }
 0x159   : > { %516 = vrot.lane.b32.xlu0 %v514_v16, %s780_s15 }
 0x1cb   : > { %v517_v17 = vpop.permute.xlu0 %516 }
 0x1cc   : > { %v519_v19 = vsub.f32 %v497_v10, %v517_v17 }
 0x1ce   : > { %523 = vrot.lane.b32.xlu0 %v519_v19, %s781_s16 }
 0x240   : > { %v524_v20 = vpop.permute.xlu0 %523 }
 0x241   : > { %526 = vst.msk [vmem:[#allocation6] sm:$0x3] %vm520_vm5, %v524_v20 }
 0x242 PF: > { %p870_p7 = scmp.eq.s32.totalorder %s610_s21, 1  ;;  %s782_s18 = smov [#allocation4]  }
 0x243   : > { %s534_s23 = sshll.u32 %s782_s18, 4  ;;  %s783_s24 = smov [#allocation6]   ;;  %s535_s23 = int_to_ptr.vmem [resolvable:$true] %s534_s23 }
 0x244   : > { %s545_s25 = sshll.u32 %s783_s24, 4  ;;  %s695_s26 = scalar_lea.vmem %s535_s23, 32  ;;  %s546_s25 = int_to_ptr.vmem [resolvable:$true] %s545_s25 }
 0x245   : > { %p696_p8 = scmp.ne.s32.totalorder %s535_s23, %s695_s26  ;;  %p702_p11 = scmp.lt.s32.totalorder %s535_s23, %s535_s23 }
 0x246   : > { %p703_p12 = scmp.lt.s32.totalorder %s695_s26, %s695_s26 }
 0x247   : > { %p697_p9 = pnand %p696_p8, %p870_p7 }
 0x248   : > { %p704_p13 = por %p703_p12, %p702_p11 }
 0x249   : > { %p698_p10 = pneg %p697_p9 }
 0x24b   : > { %p705_p0 = pnand %p704_p13, %p698_p10 }
 0x24d   : > { %708 = shalt.err (!%p705_p0)
}
 0x24e   : > { %646 = dma.vmem_to_hbm [thread:$0]  (%p870_p7), %s535_s23, 32, %s909_s4, [#allocation5]  }
 0x24f   : > { %s719_s28 = scalar_lea.vmem %s546_s25, 32  ;;  %p726_p4 = scmp.lt.s32.totalorder %s546_s25, %s546_s25 }
 0x250   : > { %p720_p1 = scmp.ne.s32.totalorder %s546_s25, %s719_s28  ;;  %p727_p5 = scmp.lt.s32.totalorder %s719_s28, %s719_s28 }
 0x252   : > { %p721_p2 = pnand %p720_p1, %p870_p7  ;;  %p728_p6 = por %p727_p5, %p726_p4 }
 0x254   : > { %p722_p3 = pneg %p721_p2 }
 0x256   : > { %p729_p8 = pnand %p728_p6, %p722_p3 }
 0x258   : > { %732 = shalt.err (!%p729_p8)
}
 0x259   : > { %648 = dma.vmem_to_hbm [thread:$0]  (%p870_p7), %s546_s25, 32, %s910_s5, [#allocation7]  }
 0x25a   : > { %756 = dma.done.wait (%p870_p7), [#allocation5], 32  }
 0x25b   : > { %758 = vsyncadd (%p870_p7), [#allocation5], 4294967264 }
 0x25c   : > { %760 = dma.done.wait (%p870_p7), [#allocation7], 32  }
 0x25d   : > { %762 = vsyncadd (%p870_p7), [#allocation7], 4294967264 }
 0x25e PF: > { %s18_s20 = sadd.s32 1, %s773_s20   ;;  %s912_s18 = smov %s769_s19 }
 0x25f   : > { %p15_p9 = scmp.ge.s32.totalorder %s18_s20, 4   ;;  %s913_s19 = smov %s915_s22 }
 0x261   :  { %17 = sbr.rel (!%p15_p9) target bundleno = 3 (0x3), region = 79 }
 0x266   :  { %562 = vsyncpa [#allocation5], 1 }
 0x267   :  { %564 = vsyncpa [#allocation5 + $0x1], 1 }
 0x268   :  { %565 = vsyncpa [#allocation7], 1 }

</bundles_post_ra>
